<compile_context>
chip_gen: v7x
topology: tpu7x:2x2x1
jax: 0.10.0
libtpu: 0.0.40
codegen_flags: <defaults>
</compile_context>

<pallas_src>
import jax
import jax.numpy as jnp
from jax import lax
from jax.experimental import pallas as pl
from jax.experimental.pallas import tpu as pltpu

EMB_DIM = 512
N_CLASSES = 5
K_SUB = 3
LANE = 128
EPS = 1e-12


def head_kernel(x_ref, w_emb_ref, w_arc_ref, cos_ref, nemb_ref):
    # x_ref:     (TB, H)        f32  (cast to bf16 in-kernel)
    # w_emb_ref: (H, 512)       bf16 (pre-transposed, VMEM-resident)
    # w_arc_ref: (512, 128)     bf16 (pre-normalized; lane j*5+c = class c, sub j)
    # cos_ref:   (TB, 128)      f32  (only lanes 0..4 valid after the rolled max)
    # nemb_ref:  (TB, 512)      f32 (or bf16 if requested)

    x_bf = x_ref[...].astype(jnp.bfloat16)

    # Linear (bias=False): emb = x @ W_emb^T on the MXU, f32 accumulation.
    emb = jnp.dot(x_bf, w_emb_ref[...],
                  preferred_element_type=jnp.float32)            # (TB, 512) f32

    # F.normalize(emb, dim=1): emb * rsqrt(max(sum(emb^2), EPS^2))  (EUP rsqrt).
    sumsq = jnp.sum(emb * emb, axis=-1, keepdims=True)
    inv = lax.rsqrt(jnp.maximum(sumsq, EPS * EPS))
    emb_n = emb * inv
    nemb_ref[...] = emb_n.astype(nemb_ref.dtype)

    # Single 128-lane sub-center matmul, bf16 operands / f32 accumulation.
    cos_all = jnp.dot(emb_n.astype(jnp.bfloat16), w_arc_ref[...],
                      preferred_element_type=jnp.float32)        # (TB, 128)

    # Sub-center max: class c lives at lanes {c, c+5, c+10}. Two XLU rolls
    # (shift 128-5 / 128-10 == roll by -5 / -10) bring sub-centers 1 and 2
    # onto lanes 0..4. Lanes >=5 become garbage; only lanes 0..4 are consumed.
    cos = jnp.maximum(
        jnp.maximum(cos_all, pltpu.roll(cos_all, LANE - N_CLASSES, 1)),
        pltpu.roll(cos_all, LANE - 2 * N_CLASSES, 1))
    cos_ref[...] = cos.astype(cos_ref.dtype)


def prepare_head_weights(w_emb, w_arc):
    """Per-model weight prep. Hoist/cache this once for inference serving.

    w_emb: (512, H) f32   -> (H, 512) bf16 (pre-transposed for the MXU)
    w_arc: (15, 512) f32  -> (512, 128) bf16, row-normalized, packed so that
                             lane j*5+c holds class c / sub-center j.
    """
    w_emb_t = jnp.transpose(w_emb).astype(jnp.bfloat16)            # (H, 512)

    w_arc_n = w_arc / jnp.maximum(
        jnp.linalg.norm(w_arc, axis=-1, keepdims=True), EPS)       # (15, 512)
    # PyTorch row c*K + j  ->  lane j*5 + c
    w_jc = jnp.transpose(
        w_arc_n.reshape(N_CLASSES, K_SUB, EMB_DIM), (1, 0, 2)
    ).reshape(K_SUB * N_CLASSES, EMB_DIM)                          # (15, 512)
    w_pad = jnp.pad(w_jc, ((0, LANE - K_SUB * N_CLASSES), (0, 0))) # (128, 512)
    w_rhs = jnp.transpose(w_pad).astype(jnp.bfloat16)              # (512, 128)
    return w_emb_t, w_rhs


def _vmem_bytes_needed(tb, H, emb_out_bytes):
    x_tile = tb * H * 4                     # streamed f32 x (double-buffered)
    cos_o = tb * LANE * 4
    emb_o = tb * EMB_DIM * emb_out_bytes
    w_res = H * EMB_DIM * 2 + EMB_DIM * LANE * 2   # resident bf16 weights
    return 2 * (x_tile + cos_o + emb_o) + 2 * w_res


def head_forward_prepared(x, w_emb_t, w_rhs, *, tb_max=1024,
                          emb_out_dtype=jnp.float32):
    """x: (B, H) f32; w_emb_t/w_rhs from prepare_head_weights."""
    B, H = x.shape
    emb_out_bytes = jnp.dtype(emb_out_dtype).itemsize

    # ---- batch tiling ----
    tb = min(tb_max, B)
    granule = 128 if tb >= 128 else 16       # MXU-aligned for big tiles, bf16 sublane granule otherwise
    tb = max(granule, ((tb + granule - 1) // granule) * granule)
    # Keep double-buffered tiles + resident weights inside ~40 MiB (v7x: 64 MiB physical).
    while tb > 128 and _vmem_bytes_needed(tb, H, emb_out_bytes) > 40 * 1024 * 1024:
        tb = max(128, (tb // 2 // 128) * 128)
    # TODO(synk): add a K-axis accumulator grid for very large hidden sizes
    # (resident bf16 w_emb stops fitting VMEM around H ~ 16K on v7x).

    n_tiles = pl.cdiv(B, tb)
    Bp = n_tiles * tb
    if Bp != B:
        # Zero rows normalize to zero (EPS clamp) -> no NaNs; sliced off below.
        x = jnp.pad(x, ((0, Bp - B), (0, 0)))

    vmem_limit = int(min(48 * 1024 * 1024,
                         max(32 * 1024 * 1024,
                             _vmem_bytes_needed(tb, H, emb_out_bytes) * 5 // 4)))

    flops = 2 * Bp * H * EMB_DIM + 2 * Bp * EMB_DIM * LANE + 4 * Bp * EMB_DIM
    bytes_accessed = (Bp * H * 4 + H * EMB_DIM * 2 + EMB_DIM * LANE * 2
                      + Bp * LANE * 4 + Bp * EMB_DIM * emb_out_bytes)

    cos_pad, emb_n = pl.pallas_call(
        head_kernel,
        out_shape=(
            jax.ShapeDtypeStruct((Bp, LANE), jnp.float32),
            jax.ShapeDtypeStruct((Bp, EMB_DIM), emb_out_dtype),
        ),
        grid=(n_tiles,),
        in_specs=[
            pl.BlockSpec((tb, H), lambda i: (i, 0)),                 # streamed per tile
            pl.BlockSpec((H, EMB_DIM), lambda i: (0, 0)),            # VMEM-resident
            pl.BlockSpec((EMB_DIM, LANE), lambda i: (0, 0)),         # VMEM-resident
        ],
        out_specs=[
            pl.BlockSpec((tb, LANE), lambda i: (i, 0)),
            pl.BlockSpec((tb, EMB_DIM), lambda i: (i, 0)),
        ],
        compiler_params=pltpu.CompilerParams(
            dimension_semantics=("parallel",),                       # megacore / v7x 2-TC
            vmem_limit_bytes=vmem_limit,
        ),
        cost_estimate=pl.CostEstimate(
            flops=flops, transcendentals=Bp, bytes_accessed=bytes_accessed),
    )(x, w_emb_t, w_rhs)

    return cos_pad[:B, :N_CLASSES], emb_n[:B]


def head_forward(x, w_emb, w_arc, *, tb_max=1024, emb_out_dtype=jnp.float32):
    """Convenience wrapper. For serving, call prepare_head_weights() once and
    reuse head_forward_prepared() so the weight prep is out of the hot path."""
    w_emb_t, w_rhs = prepare_head_weights(w_emb, w_arc)
    return head_forward_prepared(x, w_emb_t, w_rhs, tb_max=tb_max,
                                 emb_out_dtype=emb_out_dtype)


def head_reference(x, w_emb, w_arc):
    emb = x @ w_emb.T
    emb_n = emb / jnp.maximum(
        jnp.linalg.norm(emb, axis=-1, keepdims=True), EPS)
    w_n = w_arc / jnp.maximum(
        jnp.linalg.norm(w_arc, axis=-1, keepdims=True), EPS)
    cos_all = (emb_n @ w_n.T).reshape(-1, N_CLASSES, K_SUB)
    return jnp.max(cos_all, axis=2), emb_n


if __name__ == "__main__":
    B = 8
    HIDDEN = 32

    key = jax.random.PRNGKey(0)
    kx, ke, ka = jax.random.split(key, 3)

    x = jax.random.normal(kx, (B, HIDDEN), dtype=jnp.float32)
    # nn.Linear(hidden, 512, bias=False): weight (512, hidden), U(-1/sqrt(h), 1/sqrt(h))
    stdv_e = 1.0 / (HIDDEN ** 0.5)
    w_emb = jax.random.uniform(ke, (EMB_DIM, HIDDEN), jnp.float32,
                               minval=-stdv_e, maxval=stdv_e)
    # ArcMarginProduct_subcenter(512, 5, k=3): weight (15, 512), U(-1/sqrt(512), 1/sqrt(512))
    stdv_a = 1.0 / (EMB_DIM ** 0.5)
    w_arc = jax.random.uniform(ka, (N_CLASSES * K_SUB, EMB_DIM), jnp.float32,
                               minval=-stdv_a, maxval=stdv_a)

    cos, emb_n = head_forward(x, w_emb, w_arc)
    cos = jax.block_until_ready(cos)
    emb_n = jax.block_until_ready(emb_n)

    cos_ref, emb_n_ref = head_reference(x, w_emb, w_arc)
    assert cos.shape == (B, N_CLASSES) and emb_n.shape == (B, EMB_DIM)
    # bf16 MXU operands -> loosened tolerance vs the f32 reference.
    assert jnp.allclose(cos, cos_ref, atol=2e-2, rtol=2e-2), (
        float(jnp.max(jnp.abs(cos - cos_ref))))
    assert jnp.allclose(emb_n, emb_n_ref, atol=2e-2, rtol=2e-2), (
        float(jnp.max(jnp.abs(emb_n - emb_n_ref))))

    print("KERNEL_OK")
</pallas_src>

<mosaic_0001>
module attributes {stable_mosaic.version = 11 : i64} {
  func.func @head_kernel(%arg0: i32, %arg1: memref<16x32xf32, #tpu.memory_space<vmem>>, %arg2: memref<32x512xbf16, #tpu.memory_space<vmem>>, %arg3: memref<512x128xbf16, #tpu.memory_space<vmem>>, %arg4: memref<16x128xf32, #tpu.memory_space<vmem>>, %arg5: memref<16x512xf32, #tpu.memory_space<vmem>>) attributes {dimension_semantics = [#tpu.dimension_semantics<parallel>], iteration_bounds = array<i64: 1>, scalar_prefetch = 0 : i64, scratch_operands = 0 : i64, tpu.core_type = #tpu.core_type<tc>, window_params = [{transform_indices = @transform_0, window_bounds = array<i64: 16, 32>}, {pipeline_mode = #tpu.pipeline_mode<synchronous>, transform_indices = @transform_1, window_bounds = array<i64: 32, 512>}, {pipeline_mode = #tpu.pipeline_mode<synchronous>, transform_indices = @transform_2, window_bounds = array<i64: 512, 128>}, {transform_indices = @transform_3, window_bounds = array<i64: 16, 128>}, {transform_indices = @transform_4, window_bounds = array<i64: 16, 512>}]} {
    %c0 = arith.constant 0 : index
    %c0_0 = arith.constant 0 : index
    %0 = vector.load %arg1[%c0, %c0_0] : memref<16x32xf32, #tpu.memory_space<vmem>>, vector<16x32xf32>
    %1 = arith.truncf %0 : vector<16x32xf32> to vector<16x32xbf16>
    %c0_1 = arith.constant 0 : index
    %c0_2 = arith.constant 0 : index
    %2 = vector.load %arg2[%c0_1, %c0_2] : memref<32x512xbf16, #tpu.memory_space<vmem>>, vector<32x512xbf16>
    %cst = arith.constant dense<0.000000e+00> : vector<16x512xf32>
    %3 = tpu.matmul %1, %2, %cst {dimension_numbers = #tpu.dot_dimension_numbers<[1], [0], [0], [1], [0, 0, 1, 1], [], []>} : vector<16x32xbf16>, vector<32x512xbf16>, vector<16x512xf32> -> vector<16x512xf32>
    %4 = arith.mulf %3, %3 : vector<16x512xf32>
    %cst_3 = arith.constant dense<0.000000e+00> : vector<16xf32>
    %5 = vector.multi_reduction <add>, %4, %cst_3 [1] : vector<16x512xf32> to vector<16xf32>
    %6 = vector.shape_cast %5 : vector<16xf32> to vector<16x1xf32>
    %cst_4 = arith.constant 1.000000e-24 : f32
    %7 = vector.broadcast %cst_4 : f32 to vector<16x1xf32>
    %8 = arith.maximumf %6, %7 : vector<16x1xf32>
    %9 = math.rsqrt %8 : vector<16x1xf32>
    %10 = vector.broadcast %9 : vector<16x1xf32> to vector<16x512xf32>
    %11 = arith.mulf %3, %10 : vector<16x512xf32>
    %c0_5 = arith.constant 0 : index
    %c0_6 = arith.constant 0 : index
    %12 = vector.load %arg5[%c0_5, %c0_6] : memref<16x512xf32, #tpu.memory_space<vmem>>, vector<16x512xf32>
    tpu.vector_store %arg5[%c0_5, %c0_6], %11 {strides = array<i32>} : memref<16x512xf32, #tpu.memory_space<vmem>>, vector<16x512xf32>,
    %13 = arith.truncf %11 : vector<16x512xf32> to vector<16x512xbf16>
    %c0_7 = arith.constant 0 : index
    %c0_8 = arith.constant 0 : index
    %14 = vector.load %arg3[%c0_7, %c0_8] : memref<512x128xbf16, #tpu.memory_space<vmem>>, vector<512x128xbf16>
    %cst_9 = arith.constant dense<0.000000e+00> : vector<16x128xf32>
    %15 = tpu.matmul %13, %14, %cst_9 {dimension_numbers = #tpu.dot_dimension_numbers<[1], [0], [0], [1], [0, 0, 1, 1], [], []>} : vector<16x512xbf16>, vector<512x128xbf16>, vector<16x128xf32> -> vector<16x128xf32>
    %c123_i32 = arith.constant 123 : i32
    %16 = tpu.dynamic_rotate %15 by %c123_i32 dim 1 : vector<16x128xf32>, i32 -> vector<16x128xf32>
    %17 = arith.maximumf %15, %16 : vector<16x128xf32>
    %c118_i32 = arith.constant 118 : i32
    %18 = tpu.dynamic_rotate %15 by %c118_i32 dim 1 : vector<16x128xf32>, i32 -> vector<16x128xf32>
    %19 = arith.maximumf %17, %18 : vector<16x128xf32>
    %c0_10 = arith.constant 0 : index
    %c0_11 = arith.constant 0 : index
    %20 = vector.load %arg4[%c0_10, %c0_11] : memref<16x128xf32, #tpu.memory_space<vmem>>, vector<16x128xf32>
    tpu.vector_store %arg4[%c0_10, %c0_11], %19 {strides = array<i32>} : memref<16x128xf32, #tpu.memory_space<vmem>>, vector<16x128xf32>,
    return
  }
  func.func @transform_0(%arg0: i32) -> (i32, i32) {
    %c0_i32 = arith.constant 0 : i32
    %c0_i32_0 = arith.constant 0 : i32
    return %arg0, %c0_i32 : i32, i32
  }
  func.func @transform_1(%arg0: i32) -> (i32, i32) {
    %c0_i32 = arith.constant 0 : i32
    %c0_i32_0 = arith.constant 0 : i32
    %c0_i32_1 = arith.constant 0 : i32
    return %c0_i32, %c0_i32_0 : i32, i32
  }
  func.func @transform_2(%arg0: i32) -> (i32, i32) {
    %c0_i32 = arith.constant 0 : i32
    %c0_i32_0 = arith.constant 0 : i32
    %c0_i32_1 = arith.constant 0 : i32
    return %c0_i32, %c0_i32_0 : i32, i32
  }
  func.func @transform_3(%arg0: i32) -> (i32, i32) {
    %c0_i32 = arith.constant 0 : i32
    %c0_i32_0 = arith.constant 0 : i32
    return %arg0, %c0_i32 : i32, i32
  }
  func.func @transform_4(%arg0: i32) -> (i32, i32) {
    %c0_i32 = arith.constant 0 : i32
    %c0_i32_0 = arith.constant 0 : i32
    return %arg0, %c0_i32 : i32, i32
  }
}

</mosaic_0001>

<bundles_post_ra>
// kernel: tpu_custom_call.1
= control target key start
LH: loop header
LB: loop body
LE: loop exit
PB: predicated region body
PF: predicated region fallthrough
CT: control target
= control target key end

     0   :  { %10 = vsyncpa [#allocation3], 0  ;;  %s1044_s0 = inlined_call_operand.hbm [shape: f32[16,32], index: 0, kind: input, shape index: {}]   ;;  %s1045_s1 = inlined_call_operand.hbm [shape: bf16[32,512], index: 1, kind: input, shape index: {}]   ;;  %s1046_s2 = inlined_call_operand.hbm [shape: bf16[512,128], index: 2, kind: input, shape index: {}]   ;;  %s1047_s3 = inlined_call_operand.hbm [shape: f32[16,128], index: 3, kind: output, shape index: {0}]   ;;  %s1048_s4 = inlined_call_operand.hbm [shape: f32[16,512], index: 4, kind: output, shape index: {1}]  }
   0x1   :  { %11 = vsyncpa [#allocation6], 0 }
   0x2   :  { %12 = vsyncpa [#allocation4], 0 }
   0x3   :  { %13 = vsyncpa [#allocation10], 0  ;;  %s897_s15 = smov [#allocation5]   ;;  %s779_s19 = scalar_lea.hbm %s1045_s1, 1024 }
   0x4   :  { %s31_s16 = sshll.u32 %s897_s15, 4  ;;  %p780_p0 = scmp.ne.s32.totalorder %s1045_s1, %s779_s19  ;;  %s32_s16 = int_to_ptr.vmem [resolvable:$true] %s31_s16 }
   0x5   :  { %p783_p1 = scmp.lt.u32.totalorder %s779_s19, %s1045_s1 }
   0x7   :  { %p785_p2 = pnand %p783_p1, %p780_p0 }
   0x9   :  { %788 = shalt.err (!%p785_p2)
}
   0xa   :  { %s789_s24 = scalar_lea.vmem %s32_s16, 1024  ;;  %p794_p4 = scmp.lt.s32.totalorder %s32_s16, %s32_s16 }
   0xb   :  { %p790_p3 = scmp.ne.s32.totalorder %s32_s16, %s789_s24  ;;  %p795_p5 = scmp.lt.s32.totalorder %s789_s24, %s789_s24 }
   0xd   :  { %p796_p6 = por %p795_p5, %p794_p4 }
   0xf   :  { %p797_p7 = pnand %p796_p6, %p790_p3 }
  0x11   :  { %800 = shalt.err (!%p797_p7)
}
  0x12   :  { %s898_s25 = smov 256   ;;  %s899_s26 = smov 16  }
  0x13   :  { %37 = dma.hbm_to_vmem [thread:$0]  %s1045_s1, 1024, %s32_s16, [#allocation6], %s898_s25, %s898_s25, %s899_s26  }
  0x14   :  { %s900_s29 = smov [#allocation2]   ;;  %s801_s7 = scalar_lea.hbm %s1044_s0, 256 }
  0x15   :  { %s19_s30 = sshll.u32 %s900_s29, 4  ;;  %p802_p8 = scmp.ne.s32.totalorder %s1044_s0, %s801_s7  ;;  %s20_s30 = int_to_ptr.vmem [resolvable:$true] %s19_s30 }
  0x16   :  { %p805_p9 = scmp.lt.u32.totalorder %s801_s7, %s1044_s0 }
  0x18   :  { %p807_p10 = pnand %p805_p9, %p802_p8 }
  0x1a   :  { %810 = shalt.err (!%p807_p10)
}
  0x1b   :  { %s811_s12 = scalar_lea.vmem %s20_s30, 256  ;;  %p816_p12 = scmp.lt.s32.totalorder %s20_s30, %s20_s30 }
  0x1c   :  { %p812_p11 = scmp.ne.s32.totalorder %s20_s30, %s811_s12  ;;  %p817_p13 = scmp.lt.s32.totalorder %s811_s12, %s811_s12 }
  0x1e   :  { %p818_p0 = por %p817_p13, %p816_p12 }
  0x20   :  { %p819_p1 = pnand %p818_p0, %p812_p11 }
  0x22   :  { %822 = shalt.err (!%p819_p1)
}
  0x23   :  { %s901_s1 = smov 128   ;;  %s902_s13 = smov 8  }
  0x24   :  { %25 = dma.hbm_to_vmem [thread:$0]  %s1044_s0, 256, %s20_s30, [#allocation3], %s901_s1, %s901_s1, %s902_s13  }
  0x25   :  { %s903_s16 = smov [#allocation7]   ;;  %s823_s20 = scalar_lea.hbm %s1046_s2, 4096 }
  0x26   :  { %s43_s17 = sshll.u32 %s903_s16, 4  ;;  %p824_p2 = scmp.ne.s32.totalorder %s1046_s2, %s823_s20  ;;  %s44_s17 = int_to_ptr.vmem [resolvable:$true] %s43_s17 }
  0x27   :  { %p827_p3 = scmp.lt.u32.totalorder %s823_s20, %s1046_s2 }
  0x29   :  { %p829_p4 = pnand %p827_p3, %p824_p2 }
  0x2b   :  { %832 = shalt.err (!%p829_p4)
}
  0x2c   :  { %s833_s25 = scalar_lea.vmem %s44_s17, 4096  ;;  %p838_p6 = scmp.lt.s32.totalorder %s44_s17, %s44_s17 }
  0x2d   :  { %p834_p5 = scmp.ne.s32.totalorder %s44_s17, %s833_s25  ;;  %p839_p7 = scmp.lt.s32.totalorder %s833_s25, %s833_s25 }
  0x2f   :  { %p840_p8 = por %p839_p7, %p838_p6 }
  0x31   :  { %p841_p9 = pnand %p840_p8, %p834_p5 }
  0x33   :  { %844 = shalt.err (!%p841_p9)
}
  0x34   :  { %s904_s0 = smov 64   ;;  %s905_s26 = smov 4  }
  0x35   :  { %49 = dma.hbm_to_vmem [thread:$0]  %s1046_s2, 4096, %s44_s17, [#allocation6], %s904_s0, %s904_s0, %s905_s26  }
  0x36   :  { %889 = dma.done.wait [#allocation3], 256  }
  0x37   :  { %890 = vsyncadd [#allocation3], 4294967040 }
  0x38   :  { %891 = dma.done.wait [#allocation6], 5120  }
  0x39   :  { %892 = vsyncadd [#allocation6], 4294962176  ;;  %v906_v0 = vmov 0   ;;  %v731_v1 = vld [vmem:[#allocation5 + $0x4] ss:$16 sps:$4 sm:$0xff]   ;;  %v61_v10 = vld [vmem:[#allocation2 + $0x8] sm:$0xff] }
  0x3a   :  { %147 = vmatprep.mubr.bf16.mxu0 %v906_v0  ;;  %190 = vmatprep.mubr.bf16.mxu1 %v906_v0  ;;  %v733_v2 = vld [vmem:[#allocation5 + $0xc] ss:$16 sps:$4 sm:$0xff]   ;;  %v735_v3 = vld [vmem:[#allocation5] ss:$16 sps:$4 sm:$0xff]   ;;  %v736_v4 = vld [vmem:[#allocation5 + $0x8] ss:$16 sps:$4 sm:$0xff]  }
  0x3b   :  { %115 = vmatprep.subr.bf16.mxu0 %v731_v1  ;;  %158 = vmatprep.subr.bf16.mxu1 %v733_v2  ;;  %v737_v5 = vld [vmem:[#allocation5 + $0x24] ss:$16 sps:$4 sm:$0xff]   ;;  %v739_v6 = vld [vmem:[#allocation5 + $0x2c] ss:$16 sps:$4 sm:$0xff]   ;;  %v741_v7 = vld [vmem:[#allocation5 + $0x20] ss:$16 sps:$4 sm:$0xff]  }
  0x3c   :  { %116 = vmatpush1.bf16.msra.mxu0 %v735_v3  ;;  %159 = vmatpush1.bf16.msra.mxu1 %v736_v4  ;;  %v742_v8 = vld [vmem:[#allocation5 + $0x28] ss:$16 sps:$4 sm:$0xff]   ;;  %v60_v9 = vld [vmem:[#allocation2] sm:$0xff]  ;;  %vm111_vm0 = vcmask 261120   ;;  %v743_v12 = vld [vmem:[#allocation7 + $0x40] sm:$0xff]   ;;  %s907_s2 = smov [#allocation9]  }
  0x3d   :  { %117 = vmatprep.subr.bf16.mxu0 %v737_v5  ;;  %160 = vmatprep.subr.bf16.mxu1 %v739_v6  ;;  %v62_v11 = vpack.c.bf16 %v61_v10, %v60_v9  ;;  %v744_v13 = vld [vmem:[#allocation7 + $0xc0] sm:$0xff]   ;;  %v747_v16 = vld [vmem:[#allocation7 + $0x48] sm:$0xff]   ;;  %v751_v20 = vld [vmem:[#allocation7 + $0x50] sm:$0xff]   ;;  %s612_s29 = sshll.u32 %s907_s2, 4  ;;  %s613_s29 = int_to_ptr.vmem [resolvable:$true] %s612_s29 }
  0x3e   :  { %v745_v14 = vld [vmem:[#allocation7] sm:$0xff]   ;;  %v748_v17 = vld [vmem:[#allocation7 + $0xc8] sm:$0xff]   ;;  %v752_v21 = vld [vmem:[#allocation7 + $0xd0] sm:$0xff]   ;;  %s845_s30 = scalar_lea.vmem %s613_s29, 1024  ;;  %p850_p11 = scmp.lt.s32.totalorder %s613_s29, %s613_s29 }
  0x3f   :  { %v746_v15 = vld [vmem:[#allocation7 + $0x80] sm:$0xff]   ;;  %v749_v18 = vld [vmem:[#allocation7 + $0x8] sm:$0xff]   ;;  %v753_v22 = vld [vmem:[#allocation7 + $0x10] sm:$0xff]   ;;  %p846_p10 = scmp.ne.s32.totalorder %s613_s29, %s845_s30  ;;  %p851_p12 = scmp.lt.s32.totalorder %s845_s30, %s845_s30 }
  0x40   :  { %118 = vmatpush1.bf16.msra.mxu0 %v741_v7  ;;  %161 = vmatpush1.bf16.msra.mxu1 %v742_v8  ;;  %v750_v19 = vld [vmem:[#allocation7 + $0x88] sm:$0xff]   ;;  %v754_v23 = vld [vmem:[#allocation7 + $0x90] sm:$0xff]   ;;  %v755_v46 = vld [vmem:[#allocation7 + $0x58] sm:$0xff]  }
  0x41   :  { %671 = vmatprep.subr.bf16.mxu0 %v743_v12  ;;  %693 = vmatprep.subr.bf16.mxu1 %v744_v13  ;;  %v756_v47 = vld [vmem:[#allocation7 + $0xd8] sm:$0xff]   ;;  %v759_v50 = vld [vmem:[#allocation7 + $0x60] sm:$0xff]   ;;  %v763_v54 = vld [vmem:[#allocation7 + $0x68] sm:$0xff]   ;;  %p852_p13 = por %p851_p12, %p850_p11 }
  0x42   :  { %v757_v48 = vld [vmem:[#allocation7 + $0x18] sm:$0xff]   ;;  %v760_v51 = vld [vmem:[#allocation7 + $0xe0] sm:$0xff]   ;;  %v764_v55 = vld [vmem:[#allocation7 + $0xe8] sm:$0xff]  }
  0x43   :  { %637 = vmatmul.mubr.msk.bf16.vlgmr.msra.gmra.mrb[0].mxu0 %vm111_vm0, %v62_v11  ;;  %638 = vmatmul.mubr.msk.bf16.vlgmr.msra.gmra.mrb[0].mxu1 %vm111_vm0, %v62_v11  ;;  %v758_v49 = vld [vmem:[#allocation7 + $0x98] sm:$0xff]   ;;  %v761_v52 = vld [vmem:[#allocation7 + $0x20] sm:$0xff]   ;;  %v765_v56 = vld [vmem:[#allocation7 + $0x28] sm:$0xff]   ;;  %p853_p0 = pnand %p852_p13, %p846_p10 }
  0x44   :  { %672 = vmatpush3.bf16.msra.mxu0 %v745_v14  ;;  %694 = vmatpush3.bf16.msra.mxu1 %v746_v15  ;;  %v762_v53 = vld [vmem:[#allocation7 + $0xa0] sm:$0xff]   ;;  %v766_v57 = vld [vmem:[#allocation7 + $0xa8] sm:$0xff]   ;;  %v767_v58 = vld [vmem:[#allocation7 + $0x70] sm:$0xff]  }
  0x45   :  { %673 = vmatprep.subr.bf16.mxu0 %v747_v16  ;;  %695 = vmatprep.subr.bf16.mxu1 %v748_v17  ;;  %v768_v59 = vld [vmem:[#allocation7 + $0xf0] sm:$0xff]   ;;  %v771_v62 = vld [vmem:[#allocation7 + $0x78] sm:$0xff]  }
  0x46   :  { %v769_v60 = vld [vmem:[#allocation7 + $0x30] sm:$0xff]   ;;  %v772_v63 = vld [vmem:[#allocation7 + $0xf8] sm:$0xff]  }
  0x47   :  { %v770_v61 = vld [vmem:[#allocation7 + $0xb0] sm:$0xff]   ;;  %v773_v0 = vld [vmem:[#allocation7 + $0x38] sm:$0xff]  }
  0x48   :  { %674 = vmatpush3.bf16.msra.mxu0 %v749_v18  ;;  %696 = vmatpush3.bf16.msra.mxu1 %v750_v19  ;;  %v774_v1 = vld [vmem:[#allocation7 + $0xb8] sm:$0xff]  }
  0x49   :  { %675 = vmatprep.subr.bf16.mxu0 %v751_v20  ;;  %697 = vmatprep.subr.bf16.mxu1 %v752_v21 }
  0x4c   :  { %676 = vmatpush3.bf16.msra.mxu0 %v753_v22  ;;  %698 = vmatpush3.bf16.msra.mxu1 %v754_v23 }
  0x4d   :  { %677 = vmatprep.subr.bf16.mxu0 %v755_v46  ;;  %699 = vmatprep.subr.bf16.mxu1 %v756_v47 }
  0x50   :  { %678 = vmatpush3.bf16.msra.mxu0 %v757_v48  ;;  %700 = vmatpush3.bf16.msra.mxu1 %v758_v49 }
  0x51   :  { %679 = vmatprep.subr.bf16.mxu0 %v759_v50  ;;  %701 = vmatprep.subr.bf16.mxu1 %v760_v51 }
  0x54   :  { %680 = vmatpush3.bf16.msra.mxu0 %v761_v52  ;;  %702 = vmatpush3.bf16.msra.mxu1 %v762_v53 }
  0x55   :  { %681 = vmatprep.subr.bf16.mxu0 %v763_v54  ;;  %703 = vmatprep.subr.bf16.mxu1 %v764_v55 }
  0x58   :  { %682 = vmatpush3.bf16.msra.mxu0 %v765_v56  ;;  %704 = vmatpush3.bf16.msra.mxu1 %v766_v57 }
  0x59   :  { %683 = vmatprep.subr.bf16.mxu0 %v767_v58  ;;  %705 = vmatprep.subr.bf16.mxu1 %v768_v59 }
  0x5c   :  { %684 = vmatpush3.bf16.msra.mxu0 %v769_v60  ;;  %706 = vmatpush3.bf16.msra.mxu1 %v770_v61 }
  0x5d   :  { %685 = vmatprep.subr.bf16.mxu0 %v771_v62  ;;  %707 = vmatprep.subr.bf16.mxu1 %v772_v63 }
  0x60   :  { %686 = vmatpush3.bf16.msra.mxu0 %v773_v0  ;;  %708 = vmatpush3.bf16.msra.mxu1 %v774_v1 }
 0x116   :  { %v977_v24 = vpop.f32.mrb[0].mxu0  ;;  %v979_v25 = vpop.f32.mrb[0].mxu1 }
 0x117   :  { %v201_v26 = vmul.f32 %v977_v24, %v977_v24  ;;  %v983_v27 = vpop.f32.mrb[1].mxu0  ;;  %v985_v28 = vpop.f32.mrb[1].mxu1  ;;  %v203_v29 = vmul.f32 %v979_v25, %v979_v25 }
 0x118   :  { %v202_v30 = vmul.f32 %v983_v27, %v983_v27  ;;  %v991_v31 = vpop.f32.mrb[2].mxu0  ;;  %v993_v32 = vpop.f32.mrb[2].mxu1  ;;  %v204_v38 = vmul.f32 %v985_v28, %v985_v28 }
 0x119   :  { %v205_v33 = vmul.f32 %v991_v31, %v991_v31  ;;  %v997_v34 = vpop.f32.mrb[3].mxu0  ;;  %v999_v35 = vpop.f32.mrb[3].mxu1  ;;  %v207_v39 = vmul.f32 %v993_v32, %v993_v32 }
 0x11a   :  { %v209_v36 = vadd.f32 %v202_v30, %v201_v26  ;;  %v206_v37 = vmul.f32 %v997_v34, %v997_v34  ;;  %v208_v42 = vmul.f32 %v999_v35, %v999_v35 }
 0x11c   :  { %v214_v40 = vadd.f32 %v206_v37, %v205_v33  ;;  %v210_v41 = vadd.f32 %v209_v36, %v203_v29 }
 0x11e   :  { %v211_v43 = vadd.f32 %v210_v41, %v204_v38  ;;  %v215_v44 = vadd.f32 %v214_v40, %v207_v39 }
 0x120   :  { %212 = vadd.xlane.f32.xlu0 %v211_v43  ;;  %v216_v45 = vadd.f32 %v215_v44, %v208_v42 }
 0x124   :  { %217 = vadd.xlane.f32.xlu0 %v216_v45 }
 0x1ad   :  { %v213_v2 = vpop.xlane.xlu0 %212 }
 0x1ae   :  { %v219_v3 = vmax.f32 %v213_v2, 1e-24 }
 0x1b0   :  { %775 = vrsqrt.f32 %v219_v3 }
 0x1b1   :  { %v218_v4 = vpop.xlane.xlu0 %217 }
 0x1b2   :  { %v220_v5 = vmax.f32 %v218_v4, 1e-24 }
 0x1b4   :  { %777 = vrsqrt.f32 %v220_v5 }
 0x1ba   :  { %v776_v6 = vpop.eup %775 }
 0x1bb   :  { %v224_v7 = vmul.f32 %v776_v6, %v983_v27  ;;  %v226_v8 = vmul.f32 %v776_v6, %v985_v28  ;;  %v223_v9 = vmul.f32 %v776_v6, %v977_v24  ;;  %v225_v10 = vmul.f32 %v776_v6, %v979_v25 }
 0x1bd   :  { %232 = vst [vmem:[#allocation9 + $0x8] sm:$0xff] %v224_v7  ;;  %234 = vst [vmem:[#allocation9 + $0x18] sm:$0xff] %v226_v8 }
 0x1be   :  { %231 = vst [vmem:[#allocation9] sm:$0xff] %v223_v9  ;;  %233 = vst [vmem:[#allocation9 + $0x10] sm:$0xff] %v225_v10  ;;  %v778_v11 = vpop.eup %777 }
 0x1bf   :  { %v228_v12 = vmul.f32 %v778_v11, %v997_v34  ;;  %v230_v13 = vmul.f32 %v778_v11, %v999_v35  ;;  %v227_v14 = vmul.f32 %v778_v11, %v991_v31  ;;  %v229_v15 = vmul.f32 %v778_v11, %v993_v32 }
 0x1c1   :  { %236 = vst [vmem:[#allocation9 + $0x28] sm:$0xff] %v228_v12  ;;  %v240_v16 = vpack.c.bf16 %v228_v12, %v224_v7  ;;  %238 = vst [vmem:[#allocation9 + $0x38] sm:$0xff] %v230_v13  ;;  %v242_v17 = vpack.c.bf16 %v230_v13, %v226_v8  ;;  %v239_v18 = vpack.c.bf16 %v227_v14, %v223_v9 }
 0x1c2   :  { %235 = vst [vmem:[#allocation9 + $0x20] sm:$0xff] %v227_v14  ;;  %237 = vst [vmem:[#allocation9 + $0x30] sm:$0xff] %v229_v15  ;;  %v241_v19 = vpack.c.bf16 %v229_v15, %v225_v10 }
 0x1c3   :  { %531 = vmatprep.mubr.bf16.mxu0 %v240_v16  ;;  %572 = vmatprep.mubr.bf16.mxu1 %v242_v17 }
 0x1c4   :  { %532 = vmatmul.mubr.bf16.vlgmr.msra.gmra.mrb[4].mxu0 %v239_v18  ;;  %573 = vmatmul.mubr.bf16.vlgmr.msra.gmra.mrb[4].mxu1 %v241_v19 }
 0x297   :  { %v687_v20 = vpop.f32.mrb[4].mxu0  ;;  %v709_v21 = vpop.f32.mrb[4].mxu1 }
 0x298   :  { %v688_v22 = vpop.f32.mrb[5].mxu0  ;;  %v710_v23 = vpop.f32.mrb[5].mxu1 }
 0x299   :  { %v689_v24 = vadd.f32 %v688_v22, %v687_v20  ;;  %v711_v25 = vadd.f32 %v710_v23, %v709_v21  ;;  %v690_v26 = vpop.f32.mrb[6].mxu0  ;;  %v712_v27 = vpop.f32.mrb[6].mxu1 }
 0x29a   :  { %v691_v28 = vpop.f32.mrb[7].mxu0  ;;  %v713_v29 = vpop.f32.mrb[7].mxu1 }
 0x29b   :  { %v575_v30 = vadd.f32 %v711_v25, %v689_v24  ;;  %v692_v31 = vadd.f32 %v691_v28, %v690_v26  ;;  %v714_v32 = vadd.f32 %v713_v29, %v712_v27 }
 0x29c   :  { %856 = shalt.err (!%p853_p0)
}
 0x29d   :  { %s857_s7 = scalar_lea.hbm %s1048_s4, 1024 }
 0x29e   :  { %p858_p1 = scmp.ne.s32.totalorder %s1048_s4, %s857_s7  ;;  %p861_p2 = scmp.lt.u32.totalorder %s857_s7, %s1048_s4 }
 0x2a0   :  { %p863_p3 = pnand %p861_p2, %p858_p1 }
 0x2a2   :  { %866 = shalt.err (!%p863_p3)
}
 0x2a3   :  { %s908_s12 = smov 512   ;;  %s909_s14 = smov 32   ;;  %v578_v33 = vadd.f32 %v714_v32, %v692_v31 }
 0x2a4   :  { %618 = dma.vmem_to_hbm [thread:$0]  %s613_s29, 1024, %s1048_s4, [#allocation10], %s908_s12, %s908_s12, %s909_s14  }
 0x2a5   :  { %s910_s17 = smov 118   ;;  %s911_s18 = smov 123  }
 0x2a6   :  { %587 = vrot.lane.b32.xlu0 %v575_v30, %s910_s17  ;;  %581 = vrot.lane.b32.xlu1 %v575_v30, %s911_s18  ;;  %s912_s19 = smov [#allocation8]  }
 0x2a7   :  { %s600_s20 = sshll.u32 %s912_s19, 4  ;;  %s601_s20 = int_to_ptr.vmem [resolvable:$true] %s600_s20 }
 0x2a8   :  { %s867_s4 = scalar_lea.vmem %s601_s20, 256  ;;  %p872_p5 = scmp.lt.s32.totalorder %s601_s20, %s601_s20 }
 0x2a9   :  { %p868_p4 = scmp.ne.s32.totalorder %s601_s20, %s867_s4  ;;  %p873_p6 = scmp.lt.s32.totalorder %s867_s4, %s867_s4 }
 0x2aa   :  { %583 = vrot.lane.b32.xlu1 %v578_v33, %s911_s18 }
 0x2ab   :  { %p874_p7 = por %p873_p6, %p872_p5 }
 0x2ad   :  { %p875_p8 = pnand %p874_p7, %p868_p4 }
 0x2ae   :  { %589 = vrot.lane.b32.xlu1 %v578_v33, %s910_s17 }
 0x318   :  { %v582_v34 = vpop.permute.xlu1 %581  ;;  %v588_v36 = vpop.permute.xlu0 %587 }
 0x319   :  { %v585_v35 = vmax.f32 %v575_v30, %v582_v34 }
 0x31b   :  { %v591_v37 = vmax.f32 %v585_v35, %v588_v36 }
 0x31c   :  { %v584_v38 = vpop.permute.xlu1 %583 }
 0x31d   :  { %593 = vst [vmem:[#allocation8] sm:$0xff] %v591_v37  ;;  %v586_v39 = vmax.f32 %v578_v33, %v584_v38 }
 0x320   :  { %v590_v40 = vpop.permute.xlu1 %589 }
 0x321   :  { %v592_v41 = vmax.f32 %v586_v39, %v590_v40 }
 0x323   :  { %594 = vst [vmem:[#allocation8 + $0x8] sm:$0xff] %v592_v41 }
 0x324   :  { %878 = shalt.err (!%p875_p8)
}
 0x325   :  { %s879_s23 = scalar_lea.hbm %s1047_s3, 256 }
 0x326   :  { %p880_p9 = scmp.ne.s32.totalorder %s1047_s3, %s879_s23  ;;  %p883_p10 = scmp.lt.u32.totalorder %s879_s23, %s1047_s3 }
 0x328   :  { %p885_p11 = pnand %p883_p10, %p880_p9 }
 0x32a   :  { %888 = shalt.err (!%p885_p11)
}
 0x32b   :  { %606 = dma.vmem_to_hbm [thread:$0]  %s601_s20, 256, %s1047_s3, [#allocation4], %s901_s1, %s901_s1, %s902_s13  }
 0x32c   :  { %893 = dma.done.wait [#allocation4], 256  }
 0x32d   :  { %894 = vsyncadd [#allocation4], 4294967040 }
 0x32e   :  { %895 = dma.done.wait [#allocation10], 1024  }
 0x32f   :  { %896 = vsyncadd [#allocation10], 4294966272 }
 0x330   :  { %625 = vsyncpa [#allocation3], 1 }
 0x331   :  { %626 = vsyncpa [#allocation6], 1 }
 0x332   :  { %627 = vsyncpa [#allocation4], 1 }
 0x333   :  { %628 = vsyncpa [#allocation10], 1 }

</bundles_post_ra>
